<compile_context>
chip_gen: v6e
topology: v6e:2x2x1
jax: 0.10.0
libtpu: 0.0.40
codegen_flags: <defaults>
</compile_context>

<pallas_src>
import functools

import jax
import jax.numpy as jnp
from jax.experimental import pallas as pl
from jax.experimental.pallas import tpu as pltpu

T = 0.1                      # temperature, as in the module default
INV_T = 1.0 / T              # multiply instead of a per-element divide

_VMEM_LIMIT_BYTES = 48 * 1024 * 1024   # safe on v5e/v6e (128 MiB) and v7x (64 MiB)


def _kd_loss_kernel(pred_ref, teach_ref, out_ref, *, true_b, tile_b):
    i = pl.program_id(0)
    inv_t = jnp.float32(INV_T)

    # ---- teacher side first: its full-tile temporaries die before the
    # prediction-side exp is materialized (lower peak VMEM / vreg pressure).
    t = teach_ref[...].astype(jnp.float32) * inv_t
    t_max = jnp.max(t, axis=1, keepdims=True)
    t = t - t_max                                        # t_shift
    t_exp = jnp.exp(t)
    t_sum = jnp.sum(t_exp, axis=1, keepdims=True)
    wa = jnp.sum(t_exp * t, axis=1, keepdims=True)       # sum_c t_exp * t_shift

    # ---- prediction side.
    p = pred_ref[...].astype(jnp.float32) * inv_t
    p_max = jnp.max(p, axis=1, keepdims=True)
    wb = jnp.sum(t_exp * p, axis=1, keepdims=True)       # last use of t_exp
    p_sum = jnp.sum(jnp.exp(p - p_max), axis=1, keepdims=True)

    # Per-row KL (uses sum_c p2 == 1), with no (tile_b, C) divide:
    #   row_kl = (sum_c t_exp*(t_shift - p_shift)) / t_sum - log(t_sum) + log(p_sum)
    #          = (wa - wb + p_max*t_sum) * r + log(p_sum * r),   r = 1/t_sum
    r = 1.0 / t_sum
    row_kl = (wa - wb + p_max * t_sum) * r + jnp.log(p_sum * r)   # (tile_b, 1)

    # Only padded remainder rows need masking; skip entirely when the batch
    # divides evenly (known at trace time).
    if true_b % tile_b != 0:
        row_ids = jax.lax.broadcasted_iota(jnp.int32, (tile_b, 1), 0) + i * tile_b
        row_kl = jnp.where(row_ids < true_b, row_kl, 0.0)

    # Lane-dense, tile-aligned (1,8,128) partial-sum block; wrapper reads [t,0,0].
    out_ref[...] = jnp.full(out_ref.shape, jnp.sum(row_kl), dtype=jnp.float32)


def _pick_tile_b(B, C_pad, itemsize, vmem_limit_bytes):
    """Batch-tile size with VMEM accounting for inputs AND intermediates."""
    # Per row of a tile: 2 inputs x 2 pipeline buffers at input precision,
    # plus ~3 simultaneously-live (tile_b, C) f32 temporaries in the body.
    bytes_per_row = C_pad * (2 * 2 * itemsize + 3 * 4)
    budget = vmem_limit_bytes // 2          # headroom for Mosaic scratch/output
    tile = budget // max(bytes_per_row, 1)
    tile = min(tile, 1024)                  # >=512-row tiles already ~HBM roofline
    if B >= 16:                             # guarantee >=2 tiles (v7x megacore)
        tile = min(tile, max(8, (((B + 1) // 2) // 8) * 8))
    if B >= 8:
        tile = min(tile, (B // 8) * 8)
    tile = max(8, (tile // 8) * 8)          # sublane-aligned, >= 8
    return int(tile)


def kd_loss(prediction, teacher_logits):
    """prediction, teacher_logits: (B, C) logits (f32 or bf16). Scalar f32 loss.

    Tip: pass bf16 logits where acceptable — the kernel is HBM-bound and
    upcasts to f32 internally, so bf16 inputs roughly halve wall-clock.
    """
    B, C = prediction.shape

    # Keep the class axis a multiple of 128 so in-kernel lane reductions never
    # see undefined lanes. Padded classes get a very negative logit -> softmax
    # weight exactly 0 -> contribute nothing to the KL sum.
    if C % 128 != 0:
        c_extra = ((C + 127) // 128) * 128 - C
        prediction = jnp.pad(prediction, ((0, 0), (0, c_extra)),
                             constant_values=-1e30)
        teacher_logits = jnp.pad(teacher_logits, ((0, 0), (0, c_extra)),
                                 constant_values=-1e30)
    C_pad = prediction.shape[1]

    itemsize = jnp.dtype(prediction.dtype).itemsize
    tile_b = _pick_tile_b(B, C_pad, itemsize, _VMEM_LIMIT_BYTES)
    num_tiles = pl.cdiv(B, tile_b)

    kernel = functools.partial(_kd_loss_kernel, true_b=B, tile_b=tile_b)

    partials = pl.pallas_call(
        kernel,
        out_shape=jax.ShapeDtypeStruct((num_tiles, 8, 128), jnp.float32),
        grid=(num_tiles,),
        in_specs=[
            pl.BlockSpec((tile_b, C_pad), lambda i: (i, 0)),
            pl.BlockSpec((tile_b, C_pad), lambda i: (i, 0)),
        ],
        out_specs=pl.BlockSpec((1, 8, 128), lambda i: (i, 0, 0)),
        compiler_params=pltpu.CompilerParams(
            dimension_semantics=("parallel",),       # megacore on v7x
            vmem_limit_bytes=_VMEM_LIMIT_BYTES,
        ),
    )(prediction, teacher_logits)

    # TODO(synk): for vocab-scale C (>=32K) add class-axis tiling ('arbitrary'
    # K axis + online logsumexp row-state in VMEM scratch) so tiles stay large
    # within v7x's 64 MiB VMEM.

    # mean over all B*C elements, then * batch_size  ==  total / C
    # (C = original class count; padded classes contribute exactly 0).
    return jnp.sum(partials[:, 0, 0]) / jnp.float32(C)


def kd_loss_ref(prediction, teacher_logits):
    """Pure-JAX reference matching the PyTorch forward."""
    B = prediction.shape[0]
    pred = prediction.astype(jnp.float32)
    teach = teacher_logits.astype(jnp.float32)
    logp1 = jax.nn.log_softmax(pred / T, axis=1)
    p2 = jax.nn.softmax(teach / T, axis=1)
    logp2 = jax.nn.log_softmax(teach / T, axis=1)
    return jnp.mean(p2 * (logp2 - logp1)) * B


if __name__ == "__main__":
    key = jax.random.PRNGKey(0)

    cases = [
        ((8, 128), jnp.float32),    # single tile
        ((12, 128), jnp.float32),   # batch remainder -> row mask
        ((16, 200), jnp.float32),   # class axis not a multiple of 128 -> lane pad
        ((40, 256), jnp.float32),   # multiple tiles (>=2, exercises parallel axis)
        ((16, 128), jnp.bfloat16),  # bf16 inputs (half the HBM traffic)
    ]

    ok = True
    for (B, C), dtype in cases:
        key, k1, k2 = jax.random.split(key, 3)
        prediction = jax.random.normal(k1, (B, C), dtype=jnp.float32).astype(dtype)
        teacher_logits = jax.random.normal(k2, (B, C), dtype=jnp.float32).astype(dtype)

        loss = jax.block_until_ready(kd_loss(prediction, teacher_logits))
        ref = jax.block_until_ready(kd_loss_ref(prediction, teacher_logits))

        tol = 1e-4 if dtype == jnp.float32 else 1e-3
        if not jnp.allclose(loss, ref, rtol=tol, atol=tol):
            ok = False
            print("MISMATCH", (B, C), dtype, loss, ref)

    if ok:
        print("KERNEL_OK")
</pallas_src>

<mosaic_0001>
module attributes {stable_mosaic.version = 11 : i64} {
  func.func @_kd_loss_kernel(%arg0: i32, %arg1: memref<8x128xf32, #tpu.memory_space<vmem>>, %arg2: memref<8x128xf32, #tpu.memory_space<vmem>>, %arg3: memref<1x8x128xf32, #tpu.memory_space<vmem>>) attributes {dimension_semantics = [#tpu.dimension_semantics<parallel>], iteration_bounds = array<i64: 1>, scalar_prefetch = 0 : i64, scratch_operands = 0 : i64, tpu.core_type = #tpu.core_type<tc>, window_params = [{transform_indices = @transform_0, window_bounds = array<i64: 8, 128>}, {transform_indices = @transform_1, window_bounds = array<i64: 8, 128>}, {transform_indices = @transform_2, window_bounds = array<i64: 1, 8, 128>}]} {
    %c0 = arith.constant 0 : index
    %c0_0 = arith.constant 0 : index
    %0 = vector.load %arg2[%c0, %c0_0] : memref<8x128xf32, #tpu.memory_space<vmem>>, vector<8x128xf32>
    %cst = arith.constant 1.000000e+01 : f32
    %1 = vector.broadcast %cst : f32 to vector<8x128xf32>
    %2 = arith.mulf %0, %1 : vector<8x128xf32>
    %cst_1 = arith.constant dense<0xFF800000> : vector<8xf32>
    %3 = vector.multi_reduction <maximumf>, %2, %cst_1 [1] : vector<8x128xf32> to vector<8xf32>
    %4 = vector.shape_cast %3 : vector<8xf32> to vector<8x1xf32>
    %5 = vector.broadcast %4 : vector<8x1xf32> to vector<8x128xf32>
    %6 = arith.subf %2, %5 : vector<8x128xf32>
    %7 = math.exp %6 : vector<8x128xf32>
    %cst_2 = arith.constant dense<0.000000e+00> : vector<8xf32>
    %8 = vector.multi_reduction <add>, %7, %cst_2 [1] : vector<8x128xf32> to vector<8xf32>
    %9 = vector.shape_cast %8 : vector<8xf32> to vector<8x1xf32>
    %10 = arith.mulf %7, %6 : vector<8x128xf32>
    %cst_3 = arith.constant dense<0.000000e+00> : vector<8xf32>
    %11 = vector.multi_reduction <add>, %10, %cst_3 [1] : vector<8x128xf32> to vector<8xf32>
    %12 = vector.shape_cast %11 : vector<8xf32> to vector<8x1xf32>
    %c0_4 = arith.constant 0 : index
    %c0_5 = arith.constant 0 : index
    %13 = vector.load %arg1[%c0_4, %c0_5] : memref<8x128xf32, #tpu.memory_space<vmem>>, vector<8x128xf32>
    %cst_6 = arith.constant 1.000000e+01 : f32
    %14 = vector.broadcast %cst_6 : f32 to vector<8x128xf32>
    %15 = arith.mulf %13, %14 : vector<8x128xf32>
    %cst_7 = arith.constant dense<0xFF800000> : vector<8xf32>
    %16 = vector.multi_reduction <maximumf>, %15, %cst_7 [1] : vector<8x128xf32> to vector<8xf32>
    %17 = vector.shape_cast %16 : vector<8xf32> to vector<8x1xf32>
    %18 = arith.mulf %7, %15 : vector<8x128xf32>
    %cst_8 = arith.constant dense<0.000000e+00> : vector<8xf32>
    %19 = vector.multi_reduction <add>, %18, %cst_8 [1] : vector<8x128xf32> to vector<8xf32>
    %20 = vector.shape_cast %19 : vector<8xf32> to vector<8x1xf32>
    %21 = vector.broadcast %17 : vector<8x1xf32> to vector<8x128xf32>
    %22 = arith.subf %15, %21 : vector<8x128xf32>
    %23 = math.exp %22 : vector<8x128xf32>
    %cst_9 = arith.constant dense<0.000000e+00> : vector<8xf32>
    %24 = vector.multi_reduction <add>, %23, %cst_9 [1] : vector<8x128xf32> to vector<8xf32>
    %25 = vector.shape_cast %24 : vector<8xf32> to vector<8x1xf32>
    %cst_10 = arith.constant 1.000000e+00 : f32
    %26 = vector.broadcast %cst_10 : f32 to vector<8x1xf32>
    %27 = arith.divf %26, %9 : vector<8x1xf32>
    %28 = arith.subf %12, %20 : vector<8x1xf32>
    %29 = arith.mulf %17, %9 : vector<8x1xf32>
    %30 = arith.addf %28, %29 : vector<8x1xf32>
    %31 = arith.mulf %30, %27 : vector<8x1xf32>
    %32 = arith.mulf %25, %27 : vector<8x1xf32>
    %33 = math.log %32 : vector<8x1xf32>
    %34 = arith.addf %31, %33 : vector<8x1xf32>
    %35 = vector.shape_cast %34 : vector<8x1xf32> to vector<1x8x1xf32>
    %cst_11 = arith.constant dense<0.000000e+00> : vector<1xf32>
    %36 = vector.multi_reduction <add>, %35, %cst_11 [1, 2] : vector<1x8x1xf32> to vector<1xf32>
    %37 = vector.shape_cast %36 : vector<1xf32> to vector<1x1x1xf32>
    %38 = vector.extract %37[0, 0, 0] : f32 from vector<1x1x1xf32>
    %39 = vector.broadcast %38 : f32 to vector<1x8x128xf32>
    %c0_12 = arith.constant 0 : index
    %c0_13 = arith.constant 0 : index
    %c0_14 = arith.constant 0 : index
    %40 = vector.load %arg3[%c0_12, %c0_13, %c0_14] : memref<1x8x128xf32, #tpu.memory_space<vmem>>, vector<1x8x128xf32>
    tpu.vector_store %arg3[%c0_12, %c0_13, %c0_14], %39 {strides = array<i32>} : memref<1x8x128xf32, #tpu.memory_space<vmem>>, vector<1x8x128xf32>,
    return
  }
  func.func @transform_0(%arg0: i32) -> (i32, i32) {
    %c0_i32 = arith.constant 0 : i32
    %c0_i32_0 = arith.constant 0 : i32
    return %arg0, %c0_i32 : i32, i32
  }
  func.func @transform_1(%arg0: i32) -> (i32, i32) {
    %c0_i32 = arith.constant 0 : i32
    %c0_i32_0 = arith.constant 0 : i32
    return %arg0, %c0_i32 : i32, i32
  }
  func.func @transform_2(%arg0: i32) -> (i32, i32, i32) {
    %c0_i32 = arith.constant 0 : i32
    %c0_i32_0 = arith.constant 0 : i32
    %c0_i32_1 = arith.constant 0 : i32
    return %arg0, %c0_i32, %c0_i32_0 : i32, i32, i32
  }
}

</mosaic_0001>

<bundles_post_ra>
// kernel: tpu_custom_call.1
= control target key start
LH: loop header
LB: loop body
LE: loop exit
PB: predicated region body
PF: predicated region fallthrough
CT: control target
= control target key end

     0   :  { %7 = vsyncpa [#allocation3], 0  ;;  %s205_s0 = inlined_call_operand.hbm [shape: f32[8,128], index: 0, kind: input, shape index: {}]   ;;  %s206_s1 = inlined_call_operand.hbm [shape: f32[8,128], index: 1, kind: input, shape index: {}]   ;;  %s207_s2 = inlined_call_operand.hbm [shape: f32[1,8,128], index: 2, kind: output, shape index: {}]  }
   0x1   :  { %8 = vsyncpa [#allocation6], 0 }
   0x2   :  { %9 = vsyncpa [#allocation4], 0  ;;  %s178_s9 = smov [#allocation2]   ;;  %s179_s11 = smov [#allocation5]  }
   0x3   :  { %s16_s10 = sshll.u32 %s178_s9, 4  ;;  %s26_s12 = sshll.u32 %s179_s11, 4  ;;  %s17_s10 = int_to_ptr.vmem [resolvable:$true] %s16_s10  ;;  %s27_s12 = int_to_ptr.vmem [resolvable:$true] %s26_s12 }
   0x4   :  { %s120_s13 = scalar_lea.vmem %s17_s10, 128  ;;  %p125_p1 = scmp.lt.s32.totalorder %s17_s10, %s17_s10 }
   0x5   :  { %p121_p0 = scmp.ne.s32.totalorder %s17_s10, %s120_s13  ;;  %p126_p2 = scmp.lt.s32.totalorder %s120_s13, %s120_s13 }
   0x7   :  { %p127_p3 = por %p126_p2, %p125_p1 }
   0x9   :  { %p128_p4 = pnand %p127_p3, %p121_p0 }
   0xb   :  { %131 = shalt.err (!%p128_p4)
}
   0xc   :  { %19 = dma.hbm_to_vmem [thread:$0]  %s205_s0, 128, %s17_s10, [#allocation3]  }
   0xd   :  { %s140_s16 = scalar_lea.vmem %s27_s12, 128  ;;  %p145_p6 = scmp.lt.s32.totalorder %s27_s12, %s27_s12 }
   0xe   :  { %p141_p5 = scmp.ne.s32.totalorder %s27_s12, %s140_s16  ;;  %p146_p7 = scmp.lt.s32.totalorder %s140_s16, %s140_s16 }
  0x10   :  { %p147_p8 = por %p146_p7, %p145_p6 }
  0x12   :  { %p148_p9 = pnand %p147_p8, %p141_p5 }
  0x14   :  { %151 = shalt.err (!%p148_p9)
}
  0x15   :  { %29 = dma.hbm_to_vmem [thread:$0]  %s206_s1, 128, %s27_s12, [#allocation6]  }
  0x16   :  { %172 = dma.done.wait [#allocation3], 128  }
  0x17   :  { %173 = vsyncadd [#allocation3], 4294967168 }
  0x18   :  { %174 = dma.done.wait [#allocation6], 128  }
  0x19   :  { %175 = vsyncadd [#allocation6], 4294967168  ;;  %v36_v0 = vld [vmem:[#allocation5] sm:$0xff]  ;;  %v48_v1 = vld [vmem:[#allocation2] sm:$0xff]  ;;  %vm70_vm0 = vcmask 7168   ;;  %s180_s0 = smov [#allocation7]  }
  0x1a   :  { %v37_v2 = vmul.f32 10.0, %v36_v0  ;;  %v49_v3 = vmul.f32 10.0, %v48_v1  ;;  %s89_s1 = sshll.u32 %s180_s0, 4  ;;  %s90_s1 = int_to_ptr.vmem [resolvable:$true] %s89_s1 }
  0x1b   :  { %s152_s20 = scalar_lea.vmem %s90_s1, 128  ;;  %p157_p11 = scmp.lt.s32.totalorder %s90_s1, %s90_s1 }
  0x1c   :  { %38 = vmax.xlane.f32.xlu0 %v37_v2  ;;  %p153_p10 = scmp.ne.s32.totalorder %s90_s1, %s152_s20  ;;  %p158_p12 = scmp.lt.s32.totalorder %s152_s20, %s152_s20 }
  0x1e   :  { %p159_p13 = por %p158_p12, %p157_p11 }
  0x20   :  { %50 = vmax.xlane.f32.xlu0 %v49_v3  ;;  %p160_p0 = pnand %p159_p13, %p153_p10 }
  0xa5   :  { %v39_v4 = vpop.xlane.xlu0 %38 }
  0xa6   :  { %v40_v5 = vsub.f32 %v37_v2, %v39_v4 }
  0xa8   :  { %v41_v6 = vmul.f32 1.442695, %v40_v5 }
  0xa9   :  { %v51_v7 = vpop.xlane.xlu0 %50 }
  0xaa   :  { %104 = vpow2.f32 %v41_v6  ;;  %v55_v8 = vsub.f32 %v49_v3, %v51_v7 }
  0xac   :  { %v56_v9 = vmul.f32 1.442695, %v55_v8 }
  0xae   :  { %106 = vpow2.f32 %v56_v9 }
  0xb7   :  { %v105_v10 = vpop.eup %104 }
  0xb8   :  { %43 = vadd.xlane.f32.xlu1 %v105_v10  ;;  %v45_v11 = vmul.f32 %v105_v10, %v40_v5  ;;  %v52_v13 = vmul.f32 %v105_v10, %v49_v3 }
  0xba   :  { %46 = vadd.xlane.f32.xlu0 %v45_v11 }
  0xbb   :  { %v107_v12 = vpop.eup %106 }
  0xbc   :  { %58 = vadd.xlane.f32.xlu1 %v107_v12 }
  0xc0   :  { %53 = vadd.xlane.f32.xlu1 %v52_v13 }
 0x141   :  { %v44_v14 = vpop.xlane.xlu1 %43 }
 0x142   :  { %108 = vrcp.f32 %v44_v14  ;;  %v63_v21 = vmul.f32 %v51_v7, %v44_v14 }
 0x143   :  { %v47_v19 = vpop.xlane.xlu0 %46 }
 0x145   :  { %v59_v16 = vpop.xlane.xlu1 %58 }
 0x149   :  { %v54_v18 = vpop.xlane.xlu1 %53 }
 0x14a   :  { %v62_v20 = vsub.f32 %v47_v19, %v54_v18 }
 0x14c   :  { %v64_v22 = vadd.f32 %v63_v21, %v62_v20 }
 0x14f   :  { %v109_v15 = vpop.eup %108 }
 0x150   :  { %v66_v17 = vmul.f32 %v109_v15, %v59_v16  ;;  %v65_v24 = vmul.f32 %v109_v15, %v64_v22 }
 0x152   :  { %110 = vlog2.f32 %v66_v17 }
 0x15f   :  { %v111_v23 = vpop.eup %110 }
 0x160   :  { %v68_v25 = vmul.f32 0.6931472, %v111_v23 }
 0x162   :  { %v69_v26 = vadd.f32 %v68_v25, %v65_v24 }
 0x164   :  { %v71_v27 = vsel %vm70_vm0, %v69_v26, 0.0 }
 0x165   :  { %72 = vadd.xlane.f32.xlu0 %v71_v27 }
 0x1ee   :  { %v73_v28 = vpop.xlane.xlu0 %72 }
 0x1ef   :  { %v74_v29 = vrot.slane %v73_v28, 4 }
 0x1f1   :  { %v75_v30 = vadd.f32 %v74_v29, %v73_v28 }
 0x1f3   :  { %v76_v31 = vrot.slane %v75_v30, 2 }
 0x1f5   :  { %v77_v32 = vadd.f32 %v76_v31, %v75_v30 }
 0x1f7   :  { %v78_v33 = vrot.slane %v77_v32, 1 }
 0x1f9   :  { %v79_v34 = vadd.f32 %v78_v33, %v77_v32 }
 0x1fb   :  { %99 = vpush %v79_v34 }
 0x22c   :  { %s100_s19 = spop %99 }
 0x22d   :  { %v81_v35 = vstv %s100_s19 }
 0x22e   :  { %82 = vst [vmem:[#allocation7] sm:$0xff] %v81_v35 }
 0x22f   :  { %163 = shalt.err (!%p160_p0)
}
 0x230   :  { %92 = dma.vmem_to_hbm [thread:$0]  %s90_s1, 128, %s207_s2, [#allocation4]  }
 0x231   :  { %176 = dma.done.wait [#allocation4], 128  }
 0x232   :  { %177 = vsyncadd [#allocation4], 4294967168 }
 0x233   :  { %96 = vsyncpa [#allocation3], 1 }
 0x234   :  { %97 = vsyncpa [#allocation6], 1 }
 0x235   :  { %98 = vsyncpa [#allocation4], 1 }

</bundles_post_ra>
